<compile_context>
chip_gen: v7x
topology: tpu7x:2x2x1
jax: 0.10.0
libtpu: 0.0.40
codegen_flags: <defaults>
</compile_context>

<pallas_src>
import math
import jax
import jax.numpy as jnp
from jax.experimental import pallas as pl
from jax.experimental.pallas import tpu as pltpu

IN_DIMS = 2
D_MODEL = 64
NUM_HEADS = 4  # unused in the default (multi_head=False) forward path


def _attn_kernel(x_ref, wq_ref, bq_ref, wk_ref, bk_ref, out_ref):
    # x_ref: (B, T, IN_DIMS) f32 ; wq/wk: (IN_DIMS, D) f32 fused weights
    # (1/sqrt(D) folded into the q side) ; bq/bk: (1, D) f32 ; out: (B, T, T).
    x = x_ref[...]
    wq = wq_ref[...]
    wk = wk_ref[...]

    # Fused projections on the VPU (contraction dim is only IN_DIMS=2):
    # two broadcast FMAs per projection instead of a padded K=2 MXU matmul.
    q = bq_ref[...]  # (1, D) -> broadcasts to (B, T, D)
    k = bk_ref[...]
    for c in range(IN_DIMS):  # static unroll
        xc = x[:, :, c:c + 1]            # (B, T, 1)
        q = q + xc * wq[c:c + 1, :]      # (B, T, D)
        k = k + xc * wk[c:c + 1, :]

    # scores = q @ k^T per batch, contracting the shared last dim directly
    # (no explicit transpose). bf16 operands, f32 accumulation on the MXU.
    s = jnp.einsum(
        "bqd,bkd->bqk",
        q.astype(jnp.bfloat16),
        k.astype(jnp.bfloat16),
        preferred_element_type=jnp.float32,
    )  # (B, T, T); scale already folded into wq'/bq'

    # Softmax over the last dim in f32; divide goes to the EUP slot.
    m = jnp.max(s, axis=-1, keepdims=True)
    e = jnp.exp(s - m)
    denom = jnp.sum(e, axis=-1, keepdims=True)
    out_ref[...] = (e * pl.reciprocal(denom, approx=True)).astype(out_ref.dtype)


def self_attention(x, params):
    """x: (B, T, IN_DIMS) float32 -> attention (B, T, T) float32."""
    B, T, C = x.shape
    assert C == IN_DIMS
    we, be, wq, bq, wk, bk = params

    # Algebraic fusion of embedding->query / embedding->key (plain JAX, outside
    # the kernel), with the 1/sqrt(d_model) scale folded into the query side.
    scale = 1.0 / math.sqrt(D_MODEL)
    wq_f = (we @ wq) * scale               # (IN_DIMS, D_MODEL)
    bq_f = (be @ wq + bq) * scale          # (1, D_MODEL)
    wk_f = we @ wk                         # (IN_DIMS, D_MODEL)
    bk_f = be @ wk + bk                    # (1, D_MODEL)

    return pl.pallas_call(
        _attn_kernel,
        out_shape=jax.ShapeDtypeStruct((B, T, T), jnp.float32),
        grid_spec=pltpu.PrefetchScalarGridSpec(
            num_scalar_prefetch=0,
            grid=(1,),  # all batches processed in a single invocation
            in_specs=[
                pl.BlockSpec((B, T, IN_DIMS), lambda i: (0, 0, 0)),   # x
                pl.BlockSpec((IN_DIMS, D_MODEL), lambda i: (0, 0)),   # Wq'
                pl.BlockSpec((1, D_MODEL), lambda i: (0, 0)),         # bq'
                pl.BlockSpec((IN_DIMS, D_MODEL), lambda i: (0, 0)),   # Wk'
                pl.BlockSpec((1, D_MODEL), lambda i: (0, 0)),         # bk'
            ],
            out_specs=pl.BlockSpec((B, T, T), lambda i: (0, 0, 0)),
        ),
        compiler_params=pltpu.CompilerParams(
            dimension_semantics=("arbitrary",)),
    )(x, wq_f, bq_f, wk_f, bk_f)


def init_params(key):
    """Deterministic parameter init. Weights stored as (in, out) so the math is
    y = x @ W + b (equivalent to PyTorch's x @ W_t^T + b)."""
    ks = jax.random.split(key, 6)
    we = jax.random.normal(ks[0], (IN_DIMS, D_MODEL), jnp.float32) * 0.1
    be = jax.random.normal(ks[1], (1, D_MODEL), jnp.float32) * 0.1
    wq = jax.random.normal(ks[2], (D_MODEL, D_MODEL), jnp.float32) * 0.1
    bq = jax.random.normal(ks[3], (1, D_MODEL), jnp.float32) * 0.1
    wk = jax.random.normal(ks[4], (D_MODEL, D_MODEL), jnp.float32) * 0.1
    bk = jax.random.normal(ks[5], (1, D_MODEL), jnp.float32) * 0.1
    return we, be, wq, bq, wk, bk


def _reference(x, params):
    """Unfused f32 reference matching the PyTorch forward (mask/multi_head off)."""
    we, be, wq, bq, wk, bk = params
    emb = x @ we + be
    q = emb @ wq + bq
    k = emb @ wk + bk
    scores = jnp.einsum("btd,bsd->bts", q, k) / math.sqrt(D_MODEL)
    return jax.nn.softmax(scores, axis=-1)


if __name__ == "__main__":
    key = jax.random.PRNGKey(0)
    kx, kp = jax.random.split(key)

    B, T = 2, 8
    x = jax.random.normal(kx, (B, T, IN_DIMS), jnp.float32)
    params = init_params(kp)

    out = jax.block_until_ready(self_attention(x, params))
    ref = _reference(x, params)

    assert out.shape == (B, T, T)
    # Tolerance accounts for bf16 MXU operands + approx reciprocal (both far
    # below this bound for softmax outputs ~0.125).
    max_err = float(jnp.max(jnp.abs(out - ref)))
    assert jnp.allclose(out, ref, atol=2e-3, rtol=2e-3), f"max_err={max_err}"

    print("KERNEL_OK")
</pallas_src>

<mosaic_0001>
module attributes {stable_mosaic.version = 11 : i64} {
  func.func @_attn_kernel(%arg0: i32, %arg1: memref<2x8x2xf32, #tpu.memory_space<vmem>>, %arg2: memref<2x64xf32, #tpu.memory_space<vmem>>, %arg3: memref<1x64xf32, #tpu.memory_space<vmem>>, %arg4: memref<2x64xf32, #tpu.memory_space<vmem>>, %arg5: memref<1x64xf32, #tpu.memory_space<vmem>>, %arg6: memref<2x8x8xf32, #tpu.memory_space<vmem>>) attributes {dimension_semantics = [#tpu.dimension_semantics<arbitrary>], iteration_bounds = array<i64: 1>, scalar_prefetch = 0 : i64, scratch_operands = 0 : i64, tpu.core_type = #tpu.core_type<tc>, window_params = [{pipeline_mode = #tpu.pipeline_mode<synchronous>, transform_indices = @transform_0, window_bounds = array<i64: 2, 8, 2>}, {pipeline_mode = #tpu.pipeline_mode<synchronous>, transform_indices = @transform_1, window_bounds = array<i64: 2, 64>}, {pipeline_mode = #tpu.pipeline_mode<synchronous>, transform_indices = @transform_2, window_bounds = array<i64: 1, 64>}, {pipeline_mode = #tpu.pipeline_mode<synchronous>, transform_indices = @transform_3, window_bounds = array<i64: 2, 64>}, {pipeline_mode = #tpu.pipeline_mode<synchronous>, transform_indices = @transform_4, window_bounds = array<i64: 1, 64>}, {pipeline_mode = #tpu.pipeline_mode<synchronous>, transform_indices = @transform_5, window_bounds = array<i64: 2, 8, 8>}]} {
    %c0 = arith.constant 0 : index
    %c0_0 = arith.constant 0 : index
    %c0_1 = arith.constant 0 : index
    %0 = vector.load %arg1[%c0, %c0_0, %c0_1] : memref<2x8x2xf32, #tpu.memory_space<vmem>>, vector<2x8x2xf32>
    %c0_2 = arith.constant 0 : index
    %c0_3 = arith.constant 0 : index
    %1 = vector.load %arg2[%c0_2, %c0_3] : memref<2x64xf32, #tpu.memory_space<vmem>>, vector<2x64xf32>
    %c0_4 = arith.constant 0 : index
    %c0_5 = arith.constant 0 : index
    %2 = vector.load %arg4[%c0_4, %c0_5] : memref<2x64xf32, #tpu.memory_space<vmem>>, vector<2x64xf32>
    %c0_6 = arith.constant 0 : index
    %c0_7 = arith.constant 0 : index
    %3 = vector.load %arg3[%c0_6, %c0_7] : memref<1x64xf32, #tpu.memory_space<vmem>>, vector<1x64xf32>
    %c0_8 = arith.constant 0 : index
    %c0_9 = arith.constant 0 : index
    %4 = vector.load %arg5[%c0_8, %c0_9] : memref<1x64xf32, #tpu.memory_space<vmem>>, vector<1x64xf32>
    %5 = vector.extract_strided_slice %0 {offsets = [0, 0, 0], sizes = [2, 8, 1], strides = [1, 1, 1]} : vector<2x8x2xf32> to vector<2x8x1xf32>
    %6 = vector.extract_strided_slice %1 {offsets = [0, 0], sizes = [1, 64], strides = [1, 1]} : vector<2x64xf32> to vector<1x64xf32>
    %7 = vector.shape_cast %6 : vector<1x64xf32> to vector<1x1x64xf32>
    %8 = vector.broadcast %5 : vector<2x8x1xf32> to vector<2x8x64xf32>
    %9 = vector.broadcast %7 : vector<1x1x64xf32> to vector<2x8x64xf32>
    %10 = arith.mulf %8, %9 : vector<2x8x64xf32>
    %11 = vector.shape_cast %3 : vector<1x64xf32> to vector<1x1x64xf32>
    %12 = vector.broadcast %11 : vector<1x1x64xf32> to vector<2x8x64xf32>
    %13 = arith.addf %12, %10 : vector<2x8x64xf32>
    %14 = vector.extract_strided_slice %2 {offsets = [0, 0], sizes = [1, 64], strides = [1, 1]} : vector<2x64xf32> to vector<1x64xf32>
    %15 = vector.shape_cast %14 : vector<1x64xf32> to vector<1x1x64xf32>
    %16 = vector.broadcast %5 : vector<2x8x1xf32> to vector<2x8x64xf32>
    %17 = vector.broadcast %15 : vector<1x1x64xf32> to vector<2x8x64xf32>
    %18 = arith.mulf %16, %17 : vector<2x8x64xf32>
    %19 = vector.shape_cast %4 : vector<1x64xf32> to vector<1x1x64xf32>
    %20 = vector.broadcast %19 : vector<1x1x64xf32> to vector<2x8x64xf32>
    %21 = arith.addf %20, %18 : vector<2x8x64xf32>
    %22 = vector.extract_strided_slice %0 {offsets = [0, 0, 1], sizes = [2, 8, 1], strides = [1, 1, 1]} : vector<2x8x2xf32> to vector<2x8x1xf32>
    %23 = vector.extract_strided_slice %1 {offsets = [1, 0], sizes = [1, 64], strides = [1, 1]} : vector<2x64xf32> to vector<1x64xf32>
    %24 = vector.shape_cast %23 : vector<1x64xf32> to vector<1x1x64xf32>
    %25 = vector.broadcast %22 : vector<2x8x1xf32> to vector<2x8x64xf32>
    %26 = vector.broadcast %24 : vector<1x1x64xf32> to vector<2x8x64xf32>
    %27 = arith.mulf %25, %26 : vector<2x8x64xf32>
    %28 = arith.addf %13, %27 : vector<2x8x64xf32>
    %29 = vector.extract_strided_slice %2 {offsets = [1, 0], sizes = [1, 64], strides = [1, 1]} : vector<2x64xf32> to vector<1x64xf32>
    %30 = vector.shape_cast %29 : vector<1x64xf32> to vector<1x1x64xf32>
    %31 = vector.broadcast %22 : vector<2x8x1xf32> to vector<2x8x64xf32>
    %32 = vector.broadcast %30 : vector<1x1x64xf32> to vector<2x8x64xf32>
    %33 = arith.mulf %31, %32 : vector<2x8x64xf32>
    %34 = arith.addf %21, %33 : vector<2x8x64xf32>
    %35 = arith.truncf %28 : vector<2x8x64xf32> to vector<2x8x64xbf16>
    %36 = arith.truncf %34 : vector<2x8x64xf32> to vector<2x8x64xbf16>
    "tpu.trace_start"() <{level = 10 : i32, message = "bqd,bkd->bqk"}> : () -> ()
    %cst = arith.constant dense<0.000000e+00> : vector<2x8x8xf32>
    %37 = tpu.matmul %35, %36, %cst {dimension_numbers = #tpu.dot_dimension_numbers<[2], [2], [1], [1], [0, 0, 0, 1, 1, 1], [0], [0]>} : vector<2x8x64xbf16>, vector<2x8x64xbf16>, vector<2x8x8xf32> -> vector<2x8x8xf32>
    "tpu.trace_stop"() : () -> ()
    %cst_10 = arith.constant dense<0xFF800000> : vector<2x8xf32>
    %38 = vector.multi_reduction <maximumf>, %37, %cst_10 [2] : vector<2x8x8xf32> to vector<2x8xf32>
    %39 = vector.shape_cast %38 : vector<2x8xf32> to vector<2x8x1xf32>
    %40 = vector.broadcast %39 : vector<2x8x1xf32> to vector<2x8x8xf32>
    %41 = arith.subf %37, %40 : vector<2x8x8xf32>
    %42 = math.exp %41 : vector<2x8x8xf32>
    %cst_11 = arith.constant dense<0.000000e+00> : vector<2x8xf32>
    %43 = vector.multi_reduction <add>, %42, %cst_11 [2] : vector<2x8x8xf32> to vector<2x8xf32>
    %44 = vector.shape_cast %43 : vector<2x8xf32> to vector<2x8x1xf32>
    %45 = tpu.reciprocal %44 {approx = true} : vector<2x8x1xf32> -> vector<2x8x1xf32>
    %46 = vector.broadcast %45 : vector<2x8x1xf32> to vector<2x8x8xf32>
    %47 = arith.mulf %42, %46 : vector<2x8x8xf32>
    %c0_12 = arith.constant 0 : index
    %c0_13 = arith.constant 0 : index
    %c0_14 = arith.constant 0 : index
    %48 = vector.load %arg6[%c0_12, %c0_13, %c0_14] : memref<2x8x8xf32, #tpu.memory_space<vmem>>, vector<2x8x8xf32>
    tpu.vector_store %arg6[%c0_12, %c0_13, %c0_14], %47 {strides = array<i32>} : memref<2x8x8xf32, #tpu.memory_space<vmem>>, vector<2x8x8xf32>,
    return
  }
  func.func @transform_0(%arg0: i32) -> (i32, i32, i32) {
    %c0_i32 = arith.constant 0 : i32
    %c0_i32_0 = arith.constant 0 : i32
    %c0_i32_1 = arith.constant 0 : i32
    %c0_i32_2 = arith.constant 0 : i32
    return %c0_i32, %c0_i32_0, %c0_i32_1 : i32, i32, i32
  }
  func.func @transform_1(%arg0: i32) -> (i32, i32) {
    %c0_i32 = arith.constant 0 : i32
    %c0_i32_0 = arith.constant 0 : i32
    %c0_i32_1 = arith.constant 0 : i32
    return %c0_i32, %c0_i32_0 : i32, i32
  }
  func.func @transform_2(%arg0: i32) -> (i32, i32) {
    %c0_i32 = arith.constant 0 : i32
    %c0_i32_0 = arith.constant 0 : i32
    %c0_i32_1 = arith.constant 0 : i32
    return %c0_i32, %c0_i32_0 : i32, i32
  }
  func.func @transform_3(%arg0: i32) -> (i32, i32) {
    %c0_i32 = arith.constant 0 : i32
    %c0_i32_0 = arith.constant 0 : i32
    %c0_i32_1 = arith.constant 0 : i32
    return %c0_i32, %c0_i32_0 : i32, i32
  }
  func.func @transform_4(%arg0: i32) -> (i32, i32) {
    %c0_i32 = arith.constant 0 : i32
    %c0_i32_0 = arith.constant 0 : i32
    %c0_i32_1 = arith.constant 0 : i32
    return %c0_i32, %c0_i32_0 : i32, i32
  }
  func.func @transform_5(%arg0: i32) -> (i32, i32, i32) {
    %c0_i32 = arith.constant 0 : i32
    %c0_i32_0 = arith.constant 0 : i32
    %c0_i32_1 = arith.constant 0 : i32
    %c0_i32_2 = arith.constant 0 : i32
    return %c0_i32, %c0_i32_0, %c0_i32_1 : i32, i32, i32
  }
}

</mosaic_0001>

<bundles_post_ra>
// kernel: tpu_custom_call.1
= control target key start
LH: loop header
LB: loop body
LE: loop exit
PB: predicated region body
PF: predicated region fallthrough
CT: control target
= control target key end

     0   :  { %v290_v1 = vmov 1   ;;  %v291_v2 = vmov 0   ;;  %s367_s0 = inlined_call_operand.vmem [shape: f32[2,8,2], index: 0, kind: input, shape index: {}]   ;;  %s368_s1 = inlined_call_operand.vmem [shape: f32[2,64], index: 1, kind: input, shape index: {}]   ;;  %s369_s2 = inlined_call_operand.vmem [shape: f32[1,64], index: 2, kind: input, shape index: {}]   ;;  %s370_s3 = inlined_call_operand.vmem [shape: f32[2,64], index: 3, kind: input, shape index: {}]   ;;  %s371_s4 = inlined_call_operand.vmem [shape: f32[1,64], index: 4, kind: input, shape index: {}]   ;;  %s372_s5 = inlined_call_operand.hbm [shape: f32[2,8,8], index: 5, kind: output, shape index: {}]  }
   0x1   :  { %v22_v0 = vld [vmem:[%s367_s0] sm:$0xff]  ;;  %256 = vset.pattern.permute.xlu1 %v290_v1  ;;  %255 = vset.pattern.permute.xlu0 %v291_v2 }
   0x2   :  { %10 = vsyncpa [#allocation3], 0  ;;  %67 = vperm.xlu1 %256, %v22_v0   ;;  %30 = vperm.xlu0 %255, %v22_v0   ;;  %v23_v3 = vld [vmem:[%s367_s0 + $0x8] sm:$0xff]  ;;  %v292_v4 = vmov 0.0   ;;  %vm293_vm0 = vmmov 0   ;;  %v38_v5 = vlaneseq  ;;  %vm94_vm1 = vcmask 523264  }
   0x3   :  { %236 = vmatprep.subr.bf16.mxu0 %v292_v4  ;;  %242 = vmatprep.subr.bf16.mxu1 %v292_v4  ;;  %v25_v8 = vld [vmem:[%s370_s3] sm:$0x3]  ;;  %vm187_vm2 = vcmask 64512  }
   0x4   :  { %238 = vmatprep.mubr.msk.bf16.mxu0 %vm293_vm0, %v292_v4  ;;  %244 = vmatprep.mubr.msk.bf16.mxu1 %vm293_vm0, %v292_v4  ;;  %v39_v6 = vshrl.u32 %v38_v5, 7  ;;  %v24_v10 = vld [vmem:[%s368_s1] sm:$0x3]  ;;  %s294_s1 = smov [#allocation2]  }
   0x5   :  { %v229_v15 = vld [vmem:[%s371_s4] ss:$0 sm:$0xff] }
   0x6   :  { %71 = vperm.xlu1 %256, %v23_v3   ;;  %35 = vperm.xlu0 %255, %v23_v3   ;;  %v40_v7 = vsub.s32 0, %v39_v6  ;;  %v76_v9 = vsub.s32 1, %v39_v6  ;;  %v228_v22 = vld [vmem:[%s369_s2] ss:$0 sm:$0xff]  ;;  %s217_s2 = sshll.u32 %s294_s1, 4  ;;  %s218_s2 = int_to_ptr.vmem [resolvable:$true] %s217_s2 }
   0x7   :  { %s266_s4 = scalar_lea.vmem %s218_s2, 256  ;;  %p271_p1 = scmp.lt.s32.totalorder %s218_s2, %s218_s2 }
   0x8   :  { %v55_v11 = vrot.slane %v25_v8, %v40_v7  ;;  %v85_v12 = vrot.slane %v25_v8, %v76_v9  ;;  %v41_v13 = vrot.slane %v24_v10, %v40_v7  ;;  %v77_v19 = vrot.slane %v24_v10, %v76_v9  ;;  %p267_p0 = scmp.ne.s32.totalorder %s218_s2, %s266_s4  ;;  %p272_p2 = scmp.lt.s32.totalorder %s266_s4, %s266_s4 }
   0xa   :  { %257 = vset.pattern.permute.xlu0 %v290_v1  ;;  %p273_p3 = por %p272_p2, %p271_p1 }
   0xc   :  { %p274_p4 = pnand %p273_p3, %p267_p0 }
  0x81   :  { %v68_v14 = vpop.permute.xlu1 %67  ;;  %v31_v16 = vpop.permute.xlu0 %30 }
  0x82   :  { %v56_v17 = vmul.f32 %v55_v11, %v31_v16  ;;  %v86_v18 = vmul.f32 %v85_v12, %v68_v14  ;;  %v42_v20 = vmul.f32 %v41_v13, %v31_v16  ;;  %v78_v27 = vmul.f32 %v77_v19, %v68_v14 }
  0x84   :  { %v64_v21 = vadd.f32 %v229_v15, %v56_v17  ;;  %v50_v28 = vadd.f32 %v228_v22, %v42_v20 }
  0x85   :  { %v36_v23 = vpop.permute.xlu0 %35  ;;  %v72_v24 = vpop.permute.xlu1 %71 }
  0x86   :  { %v57_v25 = vmul.f32 %v55_v11, %v36_v23  ;;  %v88_v26 = vadd.f32 %v86_v18, %v64_v21  ;;  %v87_v29 = vmul.f32 %v85_v12, %v72_v24  ;;  %v43_v30 = vmul.f32 %v41_v13, %v36_v23 }
  0x87   :  { %v80_v35 = vadd.f32 %v78_v27, %v50_v28  ;;  %v79_v38 = vmul.f32 %v77_v19, %v72_v24 }
  0x88   :  { %v65_v31 = vadd.f32 %v229_v15, %v57_v25  ;;  %v92_v32 = vpack.c.bf16 %v88_v26, %v88_v26  ;;  %v51_v36 = vadd.f32 %v228_v22, %v43_v30 }
  0x89   :  { %v90_v40 = vpack.c.bf16 %v80_v35, %v80_v35 }
  0x8a   :  { %v99_v33 = vsel %vm94_vm1, %v92_v32, 0  ;;  %v89_v34 = vadd.f32 %v87_v29, %v65_v31  ;;  %v81_v41 = vadd.f32 %v79_v38, %v51_v36 }
  0x8b   :  { %237 = vmatpush3.bf16.xpose.msra.mxu0 %v99_v33 }
  0x8c   :  { %v93_v37 = vpack.c.bf16 %v89_v34, %v89_v34  ;;  %v91_v42 = vpack.c.bf16 %v81_v41, %v81_v41 }
  0x8e   :  { %v145_v39 = vsel %vm94_vm1, %v93_v37, 0 }
  0x8f   :  { %243 = vmatpush3.bf16.xpose.msra.mxu1 %v145_v39 }
  0x92   :  { %239 = vmatmul.mubr.msk.bf16.vlgmr.msra.gmra.mrb[0].mxu0 %vm94_vm1, %v90_v40 }
  0x96   :  { %245 = vmatmul.mubr.msk.bf16.vlgmr.msra.gmra.mrb[0].mxu1 %vm94_vm1, %v91_v42 }
 0x165   :  { %v135_v43 = vpop.f32.mrb[0].mxu0 }
 0x166   :  { %v240_v44 = vpop.f32.mrb[1].mxu0  ;;  %v188_v45 = vsel %vm187_vm2, %v135_v43, -inf }
 0x167   :  { %189 = vmax.xlane.f32.xlu0 %v188_v45  ;;  %v138_v46 = vpop.f32.mrb[2].mxu0 }
 0x168   :  { %v241_v47 = vpop.f32.mrb[3].mxu0 }
 0x169   :  { %v181_v48 = vpop.f32.mrb[0].mxu1 }
 0x16a   :  { %v246_v49 = vpop.f32.mrb[1].mxu1  ;;  %v191_v50 = vsel %vm187_vm2, %v181_v48, -inf }
 0x16b   :  { %192 = vmax.xlane.f32.xlu1 %v191_v50  ;;  %v184_v51 = vpop.f32.mrb[2].mxu1 }
 0x16c   :  { %v247_v52 = vpop.f32.mrb[3].mxu1 }
 0x1f4   :  { %v190_v53 = vpop.xlane.xlu0 %189 }
 0x1f5   :  { %v194_v54 = vsub.f32 %v135_v43, %v190_v53 }
 0x1f7   :  { %v196_v55 = vmul.f32 1.442695, %v194_v54 }
 0x1f8   :  { %v193_v56 = vpop.xlane.xlu1 %192 }
 0x1f9   :  { %258 = vpow2.f32 %v196_v55  ;;  %v195_v57 = vsub.f32 %v181_v48, %v193_v56 }
 0x1fb   :  { %v198_v58 = vmul.f32 1.442695, %v195_v57 }
 0x1fd   :  { %260 = vpow2.f32 %v198_v58 }
 0x203   :  { %v259_v59 = vpop.eup %258 }
 0x204   :  { %v200_v60 = vsel %vm187_vm2, %v259_v59, 0.0 }
 0x205   :  { %201 = vadd.xlane.f32.xlu0 %v200_v60 }
 0x207   :  { %v261_v61 = vpop.eup %260 }
 0x208   :  { %v203_v62 = vsel %vm187_vm2, %v261_v61, 0.0 }
 0x209   :  { %204 = vadd.xlane.f32.xlu0 %v203_v62 }
 0x292   :  { %v202_v63 = vpop.xlane.xlu0 %201 }
 0x293   :  { %262 = vrcp.f32 %v202_v63 }
 0x296   :  { %v205_v0 = vpop.xlane.xlu0 %204 }
 0x297   :  { %264 = vrcp.f32 %v205_v0 }
 0x29d   :  { %v263_v1 = vpop.eup %262 }
 0x29e   :  { %v208_v2 = vmul.f32 %v263_v1, %v259_v59 }
 0x2a0   :  { %210 = vst.msk [vmem:[#allocation2] sm:$0xff] %vm187_vm2, %v208_v2 }
 0x2a1   :  { %v265_v3 = vpop.eup %264 }
 0x2a2   :  { %v209_v4 = vmul.f32 %v265_v3, %v261_v61 }
 0x2a4   :  { %211 = vst.msk [vmem:[#allocation2 + $0x8] sm:$0xff] %vm187_vm2, %v209_v4 }
 0x2a5   :  { %277 = shalt.err (!%p274_p4)
}
 0x2a6   :  { %s278_s30 = scalar_lea.hbm %s372_s5, 256 }
 0x2a7   :  { %p279_p5 = scmp.ne.s32.totalorder %s372_s5, %s278_s30  ;;  %p282_p6 = scmp.lt.u32.totalorder %s278_s30, %s372_s5 }
 0x2a9   :  { %p284_p7 = pnand %p282_p6, %p279_p5 }
 0x2ab   :  { %287 = shalt.err (!%p284_p7)
}
 0x2ac   :  { %s295_s10 = smov 128   ;;  %s296_s11 = smov 8  }
 0x2ad   :  { %223 = dma.vmem_to_hbm [thread:$0]  %s218_s2, 256, %s372_s5, [#allocation3], %s295_s10, %s295_s10, %s296_s11  }
 0x2ae   :  { %288 = dma.done.wait [#allocation3], 256  }
 0x2af   :  { %289 = vsyncadd [#allocation3], 4294967040 }
 0x2b0   :  { %227 = vsyncpa [#allocation3], 1 }

</bundles_post_ra>
